<compile_context>
chip_gen: v6e
topology: v6e:2x2x1
jax: 0.10.0
libtpu: 0.0.40
codegen_flags: <defaults>
</compile_context>

<pallas_src>
import numpy as np
import jax
import jax.numpy as jnp
from jax import lax
from jax.experimental import pallas as pl
from jax.experimental.pallas import tpu as pltpu


def _pack_and_conv(x_ref, w_ref, b_ref, xpack_ref):
    """Circular k=3 conv of one (L, Cp) tile as a single (L,3Cp)@(3Cp,Cp) matmul."""
    L, Cp = x_ref.shape
    # tap k=1: x[l]
    xpack_ref[:, Cp:2 * Cp] = x_ref[...]
    # tap k=0: x[(l-1) mod L]
    xpack_ref[1:L, 0:Cp] = x_ref[0:L - 1, :]
    xpack_ref[0:1, 0:Cp] = x_ref[L - 1:L, :]
    # tap k=2: x[(l+1) mod L]
    xpack_ref[0:L - 1, 2 * Cp:3 * Cp] = x_ref[1:L, :]
    xpack_ref[L - 1:L, 2 * Cp:3 * Cp] = x_ref[0:1, :]
    conv = jnp.dot(xpack_ref[...], w_ref[...],
                   preferred_element_type=jnp.float32)
    return conv + b_ref[...].astype(jnp.float32)


def _stats_kernel(x_ref, w_ref, b_ref, stats_ref, xpack_ref):
    """Pass 1: accumulate per-channel sum / sum-of-squares of the conv output."""
    @pl.when(pl.program_id(0) == 0)
    def _():
        stats_ref[...] = jnp.zeros_like(stats_ref)

    conv = _pack_and_conv(x_ref, w_ref, b_ref, xpack_ref)      # (L, Cp) f32
    stats_ref[0:1, :] += jnp.sum(conv, axis=0, keepdims=True)
    stats_ref[1:2, :] += jnp.sum(conv * conv, axis=0, keepdims=True)


def _make_apply_kernel(inv_n, Lh):
    def _apply_kernel(x_ref, w_ref, b_ref, stats_ref, g_ref, beta_ref,
                      o_ref, xpack_ref, y_ref):
        L, Cp = x_ref.shape
        conv = _pack_and_conv(x_ref, w_ref, b_ref, xpack_ref)   # (L, Cp) f32

        # BatchNorm1d (training-mode batch stats, biased var, eps=1e-5)
        mean = stats_ref[0:1, :] * inv_n
        var = stats_ref[1:2, :] * inv_n - mean * mean
        scale = g_ref[...].astype(jnp.float32) * lax.rsqrt(var + 1e-5)
        shift = beta_ref[...].astype(jnp.float32) - mean * scale
        y = conv * scale + shift

        # ELU(alpha=1): expm1 on the clamped (<= 0) branch
        y_ref[...] = jnp.where(y > 0.0, y, jnp.expm1(jnp.minimum(y, 0.0)))

        # MaxPool1d(k=3, stride=2, pad=1): out[j] = max(y[2j-1], y[2j], y[2j+1])
        center = y_ref[pl.ds(0, Lh, stride=2), :]                # y[2j]
        right = y_ref[pl.ds(1, Lh, stride=2), :]                 # y[2j+1] (always in range)
        neg_row = jnp.full((1, Cp), -jnp.inf, jnp.float32)
        left = jnp.concatenate([neg_row, right[:Lh - 1, :]], axis=0)  # y[2j-1], -inf at j=0
        o_ref[...] = jnp.maximum(jnp.maximum(left, center), right).astype(o_ref.dtype)

    return _apply_kernel


def conv_layer_forward(x, conv_w, conv_b, bn_gamma, bn_beta):
    """x: (B, L, C); conv_w: (C_out, C_in, 3) torch layout. Returns (B, L//2, C)."""
    B, L, C = x.shape
    assert L % 2 == 0 and L >= 4, "sequence length must be even (>=4)"
    Lh = L // 2
    Cp = ((C + 127) // 128) * 128          # lane-dense channel padding
    dt = x.dtype

    # --- parameter packing (tiny, done once outside the hot loop) ------------
    w_t = jnp.transpose(conv_w, (2, 1, 0)).astype(dt)            # (3, C_in, C_out)
    w_pack = jnp.zeros((3, Cp, Cp), dt).at[:, :C, :C].set(w_t).reshape(3 * Cp, Cp)
    b_pad = jnp.zeros((1, Cp), dt).at[:, :C].set(conv_b.astype(dt)[None, :])
    g_pad = jnp.ones((1, Cp), jnp.float32).at[:, :C].set(
        bn_gamma.astype(jnp.float32)[None, :])
    beta_pad = jnp.zeros((1, Cp), jnp.float32).at[:, :C].set(
        bn_beta.astype(jnp.float32)[None, :])
    x_pad = x if Cp == C else jnp.pad(x, ((0, 0), (0, 0), (0, Cp - C)))

    x_spec = pl.BlockSpec((None, L, Cp), lambda b: (b, 0, 0))
    w_spec = pl.BlockSpec((3 * Cp, Cp), lambda b: (0, 0))        # resident params
    v_spec = pl.BlockSpec((1, Cp), lambda b: (0, 0))             # bias / gamma / beta
    s_spec = pl.BlockSpec((2, Cp), lambda b: (0, 0))             # BN moment accumulator

    # --- pass 1: per-channel conv moments (sum, sum of squares) --------------
    stats = pl.pallas_call(
        _stats_kernel,
        grid=(B,),
        in_specs=[x_spec, w_spec, v_spec],
        out_specs=s_spec,
        out_shape=jax.ShapeDtypeStruct((2, Cp), jnp.float32),
        scratch_shapes=[pltpu.VMEM((L, 3 * Cp), dt)],
        compiler_params=pltpu.CompilerParams(
            dimension_semantics=("arbitrary",)),
    )(x_pad, w_pack, b_pad)

    # --- pass 2: conv (recomputed) + BN + ELU + stride-2 max-pool ------------
    out_pad = pl.pallas_call(
        _make_apply_kernel(1.0 / float(B * L), Lh),
        grid=(B,),
        in_specs=[x_spec, w_spec, v_spec, s_spec, v_spec, v_spec],
        out_specs=pl.BlockSpec((None, Lh, Cp), lambda b: (b, 0, 0)),
        out_shape=jax.ShapeDtypeStruct((B, Lh, Cp), dt),
        scratch_shapes=[pltpu.VMEM((L, 3 * Cp), dt),
                        pltpu.VMEM((L, Cp), jnp.float32)],
        compiler_params=pltpu.CompilerParams(
            dimension_semantics=("parallel",)),
    )(x_pad, w_pack, b_pad, stats, g_pad, beta_pad)

    return out_pad[:, :, :C]


def reference_forward(x, conv_w, conv_b, bn_gamma, bn_beta):
    """Pure-JAX mirror of the PyTorch module (training-mode BatchNorm)."""
    B, L, C = x.shape
    Lh = L // 2
    xc = jnp.transpose(x, (0, 2, 1))                                    # (B, C, L)
    xpad = jnp.concatenate([xc[:, :, -1:], xc, xc[:, :, :1]], axis=-1)  # circular pad
    conv = lax.conv_general_dilated(
        xpad, conv_w, window_strides=(1,), padding="VALID",
        dimension_numbers=("NCH", "OIH", "NCH"),
        precision=lax.Precision.HIGHEST) + conv_b[None, :, None]
    mean = jnp.mean(conv, axis=(0, 2), keepdims=True)
    var = jnp.mean((conv - mean) ** 2, axis=(0, 2), keepdims=True)
    y = (conv - mean) / jnp.sqrt(var + 1e-5)
    y = y * bn_gamma[None, :, None] + bn_beta[None, :, None]
    y = jnp.where(y > 0, y, jnp.expm1(y))
    ypad = jnp.pad(y, ((0, 0), (0, 0), (1, 1)), constant_values=-jnp.inf)
    pooled = jnp.stack([ypad[:, :, 2 * j:2 * j + 3].max(axis=-1) for j in range(Lh)],
                       axis=-1)                                         # (B, C, Lh)
    return jnp.transpose(pooled, (0, 2, 1))                             # (B, Lh, C)


if __name__ == "__main__":
    B, L, C = 2, 16, 8   # x: [Batch, Length, Channel], c_in = C
    key = jax.random.PRNGKey(0)
    kx, kw, kb, kg, kbe = jax.random.split(key, 5)

    x = jax.random.normal(kx, (B, L, C), jnp.float32)
    fan_in = C * 3
    bound = 1.0 / (fan_in ** 0.5)
    conv_w = jax.random.uniform(kw, (C, C, 3), jnp.float32, -bound, bound)  # (O, I, K)
    conv_b = jax.random.uniform(kb, (C,), jnp.float32, -bound, bound)
    bn_gamma = 1.0 + 0.1 * jax.random.normal(kg, (C,), jnp.float32)
    bn_beta = 0.1 * jax.random.normal(kbe, (C,), jnp.float32)

    out = conv_layer_forward(x, conv_w, conv_b, bn_gamma, bn_beta)
    out = jax.block_until_ready(out)

    ref = reference_forward(x, conv_w, conv_b, bn_gamma, bn_beta)
    assert out.shape == (B, L // 2, C)
    np.testing.assert_allclose(np.asarray(out), np.asarray(ref), rtol=1e-3, atol=1e-3)
    print("KERNEL_OK")
</pallas_src>

<mosaic_0001>
module attributes {stable_mosaic.version = 11 : i64} {
  func.func @_stats_kernel(%arg0: i32, %arg1: memref<1x16x128xf32, #tpu.memory_space<vmem>>, %arg2: memref<384x128xf32, #tpu.memory_space<vmem>>, %arg3: memref<1x128xf32, #tpu.memory_space<vmem>>, %arg4: memref<2x128xf32, #tpu.memory_space<vmem>>, %arg5: memref<16x384xf32, #tpu.memory_space<vmem>>) attributes {dimension_semantics = [#tpu.dimension_semantics<arbitrary>], iteration_bounds = array<i64: 2>, scalar_prefetch = 0 : i64, scratch_operands = 1 : i64, tpu.core_type = #tpu.core_type<tc>, window_params = [{transform_indices = @transform_0, window_bounds = array<i64: 1, 16, 128>}, {pipeline_mode = #tpu.pipeline_mode<synchronous>, transform_indices = @transform_1, window_bounds = array<i64: 384, 128>}, {pipeline_mode = #tpu.pipeline_mode<synchronous>, transform_indices = @transform_2, window_bounds = array<i64: 1, 128>}, {pipeline_mode = #tpu.pipeline_mode<synchronous>, transform_indices = @transform_3, window_bounds = array<i64: 2, 128>}]} {
    %c0_i32 = arith.constant 0 : i32
    %0 = arith.cmpi eq, %arg0, %c0_i32 : i32
    %1 = arith.extui %0 : i1 to i32
    %c0_i32_0 = arith.constant 0 : i32
    %2 = arith.cmpi ne, %1, %c0_i32_0 : i32
    scf.if %2 {
      %cst_37 = arith.constant 0.000000e+00 : f32
      %35 = vector.broadcast %cst_37 : f32 to vector<2x128xf32>
      %c0_38 = arith.constant 0 : index
      %c0_39 = arith.constant 0 : index
      %36 = vector.load %arg4[%c0_38, %c0_39] : memref<2x128xf32, #tpu.memory_space<vmem>>, vector<2x128xf32>
      tpu.vector_store %arg4[%c0_38, %c0_39], %35 {strides = array<i32>} : memref<2x128xf32, #tpu.memory_space<vmem>>, vector<2x128xf32>,
    } else {
    }
    %c0 = arith.constant 0 : index
    %c0_1 = arith.constant 0 : index
    %c0_2 = arith.constant 0 : index
    %3 = vector.load %arg1[%c0, %c0_1, %c0_2] : memref<1x16x128xf32, #tpu.memory_space<vmem>>, vector<1x16x128xf32>
    %4 = vector.shape_cast %3 : vector<1x16x128xf32> to vector<16x128xf32>
    %c0_3 = arith.constant 0 : index
    %c128 = arith.constant 128 : index
    %5 = vector.load %arg5[%c0_3, %c128] : memref<16x384xf32, #tpu.memory_space<vmem>>, vector<16x128xf32>
    tpu.vector_store %arg5[%c0_3, %c128], %4 {strides = array<i32>} : memref<16x384xf32, #tpu.memory_space<vmem>>, vector<16x128xf32>,
    %c0_4 = arith.constant 0 : index
    %c0_5 = arith.constant 0 : index
    %c0_6 = arith.constant 0 : index
    %6 = vector.load %arg1[%c0_4, %c0_5, %c0_6] : memref<1x16x128xf32, #tpu.memory_space<vmem>>, vector<1x15x128xf32>
    %7 = vector.shape_cast %6 : vector<1x15x128xf32> to vector<15x128xf32>
    %c1 = arith.constant 1 : index
    %c0_7 = arith.constant 0 : index
    %8 = vector.load %arg5[%c1, %c0_7] : memref<16x384xf32, #tpu.memory_space<vmem>>, vector<15x128xf32>
    tpu.vector_store %arg5[%c1, %c0_7], %7 {strides = array<i32>} : memref<16x384xf32, #tpu.memory_space<vmem>>, vector<15x128xf32>,
    %c0_8 = arith.constant 0 : index
    %c15 = arith.constant 15 : index
    %c0_9 = arith.constant 0 : index
    %9 = vector.load %arg1[%c0_8, %c15, %c0_9] : memref<1x16x128xf32, #tpu.memory_space<vmem>>, vector<1x1x128xf32>
    %10 = vector.shape_cast %9 : vector<1x1x128xf32> to vector<1x128xf32>
    %c0_10 = arith.constant 0 : index
    %c0_11 = arith.constant 0 : index
    %11 = vector.load %arg5[%c0_10, %c0_11] : memref<16x384xf32, #tpu.memory_space<vmem>>, vector<1x128xf32>
    tpu.vector_store %arg5[%c0_10, %c0_11], %10 {strides = array<i32>} : memref<16x384xf32, #tpu.memory_space<vmem>>, vector<1x128xf32>,
    %c0_12 = arith.constant 0 : index
    %c1_13 = arith.constant 1 : index
    %c0_14 = arith.constant 0 : index
    %12 = vector.load %arg1[%c0_12, %c1_13, %c0_14] : memref<1x16x128xf32, #tpu.memory_space<vmem>>, vector<1x15x128xf32>
    %13 = vector.shape_cast %12 : vector<1x15x128xf32> to vector<15x128xf32>
    %c0_15 = arith.constant 0 : index
    %c256 = arith.constant 256 : index
    %14 = vector.load %arg5[%c0_15, %c256] : memref<16x384xf32, #tpu.memory_space<vmem>>, vector<15x128xf32>
    tpu.vector_store %arg5[%c0_15, %c256], %13 {strides = array<i32>} : memref<16x384xf32, #tpu.memory_space<vmem>>, vector<15x128xf32>,
    %c0_16 = arith.constant 0 : index
    %c0_17 = arith.constant 0 : index
    %c0_18 = arith.constant 0 : index
    %15 = vector.load %arg1[%c0_16, %c0_17, %c0_18] : memref<1x16x128xf32, #tpu.memory_space<vmem>>, vector<1x1x128xf32>
    %16 = vector.shape_cast %15 : vector<1x1x128xf32> to vector<1x128xf32>
    %c15_19 = arith.constant 15 : index
    %c256_20 = arith.constant 256 : index
    %17 = vector.load %arg5[%c15_19, %c256_20] : memref<16x384xf32, #tpu.memory_space<vmem>>, vector<1x128xf32>
    tpu.vector_store %arg5[%c15_19, %c256_20], %16 {strides = array<i32>} : memref<16x384xf32, #tpu.memory_space<vmem>>, vector<1x128xf32>,
    %c0_21 = arith.constant 0 : index
    %c0_22 = arith.constant 0 : index
    %18 = vector.load %arg5[%c0_21, %c0_22] : memref<16x384xf32, #tpu.memory_space<vmem>>, vector<16x384xf32>
    %c0_23 = arith.constant 0 : index
    %c0_24 = arith.constant 0 : index
    %19 = vector.load %arg2[%c0_23, %c0_24] : memref<384x128xf32, #tpu.memory_space<vmem>>, vector<384x128xf32>
    %cst = arith.constant dense<0.000000e+00> : vector<16x128xf32>
    %20 = tpu.matmul %18, %19, %cst {dimension_numbers = #tpu.dot_dimension_numbers<[1], [0], [0], [1], [0, 0, 1, 1], [], []>} : vector<16x384xf32>, vector<384x128xf32>, vector<16x128xf32> -> vector<16x128xf32>
    %c0_25 = arith.constant 0 : index
    %c0_26 = arith.constant 0 : index
    %21 = vector.load %arg3[%c0_25, %c0_26] : memref<1x128xf32, #tpu.memory_space<vmem>>, vector<1x128xf32>
    %22 = vector.broadcast %21 : vector<1x128xf32> to vector<16x128xf32>
    %23 = arith.addf %20, %22 : vector<16x128xf32>
    %c0_27 = arith.constant 0 : index
    %c0_28 = arith.constant 0 : index
    %24 = vector.load %arg4[%c0_27, %c0_28] : memref<2x128xf32, #tpu.memory_space<vmem>>, vector<1x128xf32>
    %cst_29 = arith.constant dense<0.000000e+00> : vector<128xf32>
    %25 = vector.multi_reduction <add>, %23, %cst_29 [0] : vector<16x128xf32> to vector<128xf32>
    %26 = vector.shape_cast %25 : vector<128xf32> to vector<1x128xf32>
    %27 = arith.addf %24, %26 : vector<1x128xf32>
    %c0_30 = arith.constant 0 : index
    %c0_31 = arith.constant 0 : index
    %28 = vector.load %arg4[%c0_30, %c0_31] : memref<2x128xf32, #tpu.memory_space<vmem>>, vector<1x128xf32>
    tpu.vector_store %arg4[%c0_30, %c0_31], %27 {strides = array<i32>} : memref<2x128xf32, #tpu.memory_space<vmem>>, vector<1x128xf32>,
    %c1_32 = arith.constant 1 : index
    %c0_33 = arith.constant 0 : index
    %29 = vector.load %arg4[%c1_32, %c0_33] : memref<2x128xf32, #tpu.memory_space<vmem>>, vector<1x128xf32>
    %30 = arith.mulf %23, %23 : vector<16x128xf32>
    %cst_34 = arith.constant dense<0.000000e+00> : vector<128xf32>
    %31 = vector.multi_reduction <add>, %30, %cst_34 [0] : vector<16x128xf32> to vector<128xf32>
    %32 = vector.shape_cast %31 : vector<128xf32> to vector<1x128xf32>
    %33 = arith.addf %29, %32 : vector<1x128xf32>
    %c1_35 = arith.constant 1 : index
    %c0_36 = arith.constant 0 : index
    %34 = vector.load %arg4[%c1_35, %c0_36] : memref<2x128xf32, #tpu.memory_space<vmem>>, vector<1x128xf32>
    tpu.vector_store %arg4[%c1_35, %c0_36], %33 {strides = array<i32>} : memref<2x128xf32, #tpu.memory_space<vmem>>, vector<1x128xf32>,
    return
  }
  func.func @transform_0(%arg0: i32) -> (i32, i32, i32) {
    %c0_i32 = arith.constant 0 : i32
    %c0_i32_0 = arith.constant 0 : i32
    %c0_i32_1 = arith.constant 0 : i32
    return %arg0, %c0_i32, %c0_i32_0 : i32, i32, i32
  }
  func.func @transform_1(%arg0: i32) -> (i32, i32) {
    %c0_i32 = arith.constant 0 : i32
    %c0_i32_0 = arith.constant 0 : i32
    %c0_i32_1 = arith.constant 0 : i32
    return %c0_i32, %c0_i32_0 : i32, i32
  }
  func.func @transform_2(%arg0: i32) -> (i32, i32) {
    %c0_i32 = arith.constant 0 : i32
    %c0_i32_0 = arith.constant 0 : i32
    %c0_i32_1 = arith.constant 0 : i32
    return %c0_i32, %c0_i32_0 : i32, i32
  }
  func.func @transform_3(%arg0: i32) -> (i32, i32) {
    %c0_i32 = arith.constant 0 : i32
    %c0_i32_0 = arith.constant 0 : i32
    %c0_i32_1 = arith.constant 0 : i32
    return %c0_i32, %c0_i32_0 : i32, i32
  }
}

</mosaic_0001>

<bundles_post_ra>
// kernel: tpu_custom_call.1
= control target key start
LH: loop header
LB: loop body
LE: loop exit
PB: predicated region body
PF: predicated region fallthrough
CT: control target
= control target key end

     0   :  { %8 = vsyncpa [#allocation4], 0  ;;  %s998_s0 = inlined_call_operand.hbm [shape: f32[2,16,128], index: 0, kind: input, shape index: {}]   ;;  %s999_s1 = inlined_call_operand.hbm [shape: f32[384,128], index: 1, kind: input, shape index: {}]   ;;  %s1000_s2 = inlined_call_operand.vmem [shape: f32[1,128], index: 2, kind: input, shape index: {}]   ;;  %s1001_s3 = inlined_call_operand.hbm [shape: f32[2,128], index: 3, kind: output, shape index: {}]  }
   0x1   :  { %10 = vsyncpa [#allocation4 + $0x1], 0 }
   0x2   :  { %11 = vsyncpa [#allocation7], 0 }
   0x3   :  { %12 = vsyncpa [#allocation5], 0  ;;  %s837_s12 = smov 0   ;;  %s839_s13 = smov 0  }
   0x4   :  { %s841_s14 = smov 0   ;;  %s843_s15 = smov 0  }
   0x5 LB: > { %s856_s16 = sadd.s32 4294967295, %s809_s15   ;;  %p38_p0 = scmp.ne.s32.totalorder %s801_s13, %s797_s12  ;;  %s809_s15 = sphi %s843_s15, %s1017_s15   ;;  %s805_s14 = sphi %s841_s14, %s1016_s14   ;;  %s801_s13 = sphi %s839_s13, %s1015_s13   ;;  %s797_s12 = sphi %s837_s12, %s1014_s12  }
   0x6   : > { %p1002_p1 = scmp.eq.s32.totalorder %s856_s16, 0  ;;  %p522_p2 = scmp.ge.s32.totalorder %s809_s15, 1 }
   0x7   : > { %p112_p3 = scmp.lt.s32.totalorder %s809_s15, 3  ;;  %s811_s19 = smov [#allocation6]  }
   0x8   : > { %p865_p5 = por %p1002_p1, %p38_p0  ;;  %s124_s20 = sshll.u32 %s811_s19, 4  ;;  %s125_s20 = int_to_ptr.vmem [resolvable:$true] %s124_s20 }
   0x9   : > { %p869_p6 = pnand %p522_p2, %p112_p3  ;;  %s882_s22 = sadd.s32 1, %s809_s15  }
   0xa   : > { %s1005_s17 = scalar_select %p865_p5, 1, 0 }
   0xb   : > { %s1006_s18 = scalar_select %p869_p6, 1, 0 }
   0xc   : > { %p639_p7 = pneg %p869_p6  ;;  %s25_s23 = sadd.s32 1, %s805_s14 }
   0xd   : > { %s22_s24 = ssub.s32 %s809_s15, %s882_s22  ;;  %s700_s25 = scalar_lea.vmem %s125_s20, 6144 }
   0xe   : > { %p877_p8 = pnand %p639_p7, %p1002_p1  ;;  %p701_p10 = scmp.ne.s32.totalorder %s125_s20, %s700_s25 }
   0xf   : > { %p708_p13 = scmp.lt.s32.totalorder %s125_s20, %s125_s20  ;;  %p709_p0 = scmp.lt.s32.totalorder %s700_s25, %s700_s25 }
  0x10   : > { %p691_p9 = pneg %p877_p8 }
  0x11   : > { %p710_p2 = por %p709_p0, %p708_p13 }
  0x12   : > { %p703_p11 = pnand %p701_p10, %p691_p9 }
  0x14   : > { %p704_p12 = pneg %p703_p11 }
  0x16   : > { %p711_p3 = pnand %p710_p2, %p704_p12 }
  0x18   : > { %714 = shalt.err (!%p711_p3)
}
  0x19   : > { %s812_s26 = smov 128   ;;  %s813_s27 = smov 8  }
  0x1a   : > { %642 = dma.hbm_to_vmem [thread:$0]  (!%p877_p8), %s999_s1, 6144, %s125_s20, [#allocation7], %s812_s26, %s812_s26, %s813_s27  }
  0x1b   : > { %p23_p7 = scmp.eq.s32.totalorder %s22_s24, 0  ;;  %p32_p9 = scmp.ne.s32.totalorder %s805_s14, %s801_s13 }
  0x1c   : > { %p33_p10 = scmp.eq.s32.totalorder %s809_s15, 0  ;;  %p648_p11 = scmp.lt.s32.totalorder %s809_s15, 2 }
  0x1d   : > { %s902_s30 = scalar_select %p23_p7, %s805_s14, %s25_s23  }
  0x1e   : > { %p34_p12 = por %p33_p10, %p32_p9  ;;  %s141_s4 = sand.u32 1, %s805_s14  }
  0x1f   : > { %s525_s5 = sshll.u32 %s141_s4, 4  ;;  %s537_s6 = sshll.u32 %s809_s15, 8 }
  0x20   : > { %s909_s9 = scalar_lea.hbm %s998_s0, %s537_s6  ;;  %s145_s10 = scalar_lea.vmem [#allocation3], %s525_s5 }
  0x21   : > { %s152_s11 = sshll.u32 %s145_s10, 4  ;;  %p913_p8 = pnand %p648_p11, %p34_p12  ;;  %s911_s11 = int_to_ptr.vmem [resolvable:$true] %s152_s11 }
  0x22   : > { %s917_s19 = scalar_lea.sflag [#allocation4], %s141_s4  ;;  %s715_s15 = scalar_lea.hbm %s909_s9, 256 }
  0x23   : > { %p716_p13 = scmp.ne.s32.totalorder %s909_s9, %s715_s15  ;;  %p717_p0 = pneg %p913_p8 }
  0x24   : > { %s720_s23 = scalar_lea.hbm %s998_s0, 512  ;;  %p721_p7 = scmp.lt.s32.totalorder %s909_s9, %s998_s0 }
  0x25   : > { %p718_p2 = pnand %p717_p0, %p716_p13  ;;  %p722_p9 = scmp.lt.s32.totalorder %s720_s23, %s715_s15 }
  0x27   : > { %p719_p3 = pneg %p718_p2  ;;  %p723_p10 = por %p722_p9, %p721_p7 }
  0x29   : > { %p724_p11 = pnand %p723_p10, %p719_p3 }
  0x2b   : > { %727 = shalt.err (!%p724_p11)
}
  0x2c   : > { %s728_s28 = scalar_lea.vmem %s911_s11, 256  ;;  %s814_s29 = smov [#allocation3]  }
  0x2d   : > { %p729_p12 = scmp.ne.s32.totalorder %s911_s11, %s728_s28  ;;  %s733_s4 = sshll.u32 %s814_s29, 4  ;;  %s734_s4 = int_to_ptr.vmem [resolvable:$false] %s733_s4 }
  0x2e   : > { %s735_s5 = scalar_lea.vmem %s734_s4, 512  ;;  %p736_p2 = scmp.lt.s32.totalorder %s911_s11, %s734_s4 }
  0x2f   : > { %p731_p4 = pnand %p729_p12, %p717_p0  ;;  %p737_p1 = scmp.lt.s32.totalorder %s735_s5, %s728_s28 }
  0x31   : > { %p732_p13 = pneg %p731_p4  ;;  %p738_p5 = por %p737_p1, %p736_p2 }
  0x33   : > { %p739_p6 = pnand %p738_p5, %p732_p13 }
  0x35   : > { %742 = shalt.err (!%p739_p6)
}
  0x36   : > { %646 = dma.hbm_to_vmem [thread:$0]  (!%p913_p8), %s909_s9, 256, %s911_s11, %s917_s19, %s812_s26, %s812_s26, %s813_s27  }
  0x37   : > { %p1009_p4 = scmp.ne.s32.totalorder %s1006_s18, 0 }
  0x38   : > { %s166_s6 = sand.u32 (!%p1009_p4), 1, %s801_s13   ;;  %p1010_p1 = scmp.ne.s32.totalorder (!%p1009_p4), %s1005_s17, 0 }
  0x39   : > { %164 = sbr.rel (%p1009_p4) target bundleno = 336 (0x150), region = 32  ;;  %s529_s7 = sshll.u32 (!%p1009_p4), %s166_s6, 4 }
  0x3a   : > { %s167_s8 = scalar_lea.sflag (!%p1009_p4), [#allocation4], %s166_s6  ;;  %s944_s10 = scalar_lea.vmem (!%p1009_p4), [#allocation3], %s529_s7 }
  0x3e   : > { %784 = dma.done.wait (%p1010_p1), %s167_s8, 256  }
  0x3f   : > { %786 = vsyncadd (%p1010_p1), %s167_s8, 4294967040  ;;  %p1011_p5 = scmp.eq.s32.totalorder %s856_s16, 0 }
  0x41   : > { %788 = dma.done.wait (%p1011_p5), [#allocation7], 6144   ;;  %p1012_p6 = pmov %p1011_p5 }
  0x42   : > { %p1013_p8 = scmp.ne.s32.totalorder %s856_s16, 0 }
  0x43   : > { %790 = vsyncadd (%p1012_p6), [#allocation7], 4294961152 }
  0x44   : > { %195 = sbr.rel (%p1013_p8) target bundleno = 75 (0x4b), region = 44 }
  0x49   : > { %v815_v0 = vmov 0.0  }
  0x4a   : > { %196 = vst [vmem:[#allocation8] sm:$0x3] %v815_v0 }
  0x4b PF: > { %v258_v1 = vld [vmem:[#allocation6 + $0xf8] sm:$0xff]  ;;  %v257_v3 = vld [vmem:[#allocation6 + $0xf0] sm:$0xff]  ;;  %v256_v6 = vld [vmem:[#allocation6 + $0xe8] sm:$0xff]  ;;  %vm205_vm0 = vcmask 1040384   ;;  %s816_s26 = smov [#allocation8]   ;;  %p650_p0 = scmp.eq.s32.totalorder %s856_s16, 1 }
  0x4c   : > { %v242_v2 = vld [vmem:[#allocation6 + $0x78] sm:$0xff]  ;;  %538 = vmatprep.subr.mxu0 %v258_v1  ;;  %v241_v4 = vld [vmem:[#allocation6 + $0x70] sm:$0xff]  ;;  %v240_v8 = vld [vmem:[#allocation6 + $0x68] sm:$0xff]  ;;  %s461_s27 = sshll.u32 %s816_s26, 4  ;;  %s462_s27 = int_to_ptr.vmem [resolvable:$true] %s461_s27 }
  0x4d   : > { %v274_v5 = vld [vmem:[#allocation6 + $0x178] sm:$0xff]  ;;  %539 = vmatpush3.msra.mxu0 %v242_v2  ;;  %v273_v7 = vld [vmem:[#allocation6 + $0x170] sm:$0xff]  ;;  %v272_v9 = vld [vmem:[#allocation6 + $0x168] sm:$0xff]  ;;  %s743_s9 = scalar_lea.vmem %s462_s27, 32  ;;  %p750_p10 = scmp.lt.s32.totalorder %s462_s27, %s462_s27 }
  0x4e   : > { %594 = vmatprep.subr.mxu1 %v274_v5  ;;  %540 = vmatprep.subr.mxu0 %v257_v3  ;;  %v255_v10 = vld [vmem:[#allocation6 + $0xe0] sm:$0xff]  ;;  %v254_v13 = vld [vmem:[#allocation6 + $0xd8] sm:$0xff]  ;;  %v253_v16 = vld [vmem:[#allocation6 + $0xd0] sm:$0xff]  ;;  %p744_p3 = scmp.ne.s32.totalorder %s462_s27, %s743_s9  ;;  %p751_p11 = scmp.lt.s32.totalorder %s743_s9, %s743_s9 }
  0x4f   : > { %595 = vmatpush3.msra.mxu1 %v274_v5  ;;  %541 = vmatpush3.msra.mxu0 %v241_v4  ;;  %v239_v11 = vld [vmem:[#allocation6 + $0x60] sm:$0xff]  ;;  %v238_v14 = vld [vmem:[#allocation6 + $0x58] sm:$0xff]  ;;  %v237_v17 = vld [vmem:[#allocation6 + $0x50] sm:$0xff] }
  0x50   : > { %596 = vmatprep.subr.mxu1 %v273_v7  ;;  %542 = vmatprep.subr.mxu0 %v256_v6  ;;  %v271_v12 = vld [vmem:[#allocation6 + $0x160] sm:$0xff]  ;;  %v270_v15 = vld [vmem:[#allocation6 + $0x158] sm:$0xff]  ;;  %v269_v18 = vld [vmem:[#allocation6 + $0x150] sm:$0xff]  ;;  %p745_p7 = pnand %p744_p3, %p650_p0  ;;  %p752_p12 = por %p751_p11, %p750_p10 }
  0x51   : > { %597 = vmatpush3.msra.mxu1 %v273_v7  ;;  %543 = vmatpush3.msra.mxu0 %v240_v8  ;;  %v252_v19 = vld [vmem:[#allocation6 + $0xc8] sm:$0xff]  ;;  %v251_v22 = vld [vmem:[#allocation6 + $0xc0] sm:$0xff]  ;;  %v250_v25 = vld [vmem:[#allocation6 + $0xb8] sm:$0xff] }
  0x52   : > { %598 = vmatprep.subr.mxu1 %v272_v9  ;;  %544 = vmatprep.subr.mxu0 %v255_v10  ;;  %v236_v20 = vld [vmem:[#allocation6 + $0x48] sm:$0xff]  ;;  %v235_v23 = vld [vmem:[#allocation6 + $0x40] sm:$0xff]  ;;  %v234_v26 = vld [vmem:[#allocation6 + $0x38] sm:$0xff]  ;;  %p746_p9 = pneg %p745_p7 }
  0x53   : > { %599 = vmatpush3.msra.mxu1 %v272_v9  ;;  %545 = vmatpush3.msra.mxu0 %v239_v11  ;;  %v268_v21 = vld [vmem:[#allocation6 + $0x148] sm:$0xff]  ;;  %v267_v24 = vld [vmem:[#allocation6 + $0x140] sm:$0xff]  ;;  %v249_v27 = vld [vmem:[#allocation6 + $0xb0] sm:$0xff] }
  0x54   : > { %600 = vmatprep.subr.mxu1 %v271_v12  ;;  %546 = vmatprep.subr.mxu0 %v254_v13  ;;  %v266_v28 = vld [vmem:[#allocation6 + $0x138] sm:$0xff]  ;;  %v197_v29 = vld [vmem:[%s944_s10] sm:$0xff]  ;;  %v248_v38 = vld [vmem:[#allocation6 + $0xa8] sm:$0xff]  ;;  %p753_p13 = pnand %p752_p12, %p746_p9 }
  0x55   : > { %601 = vmatpush3.msra.mxu1 %v271_v12  ;;  %547 = vmatpush3.msra.mxu0 %v238_v14  ;;  %v213_v30 = vld [vmem:[%s944_s10 + $0xf] sm:$0x1]  ;;  %v233_v31 = vld [vmem:[#allocation6 + $0x30] sm:$0xff]  ;;  %v206_v33 = vrot.slane %v197_v29, 7  ;;  %v202_v36 = vld [vmem:[%s944_s10 + $0x8] sm:$0x7f] }
  0x56   : > { %602 = vmatprep.subr.mxu1 %v270_v15  ;;  %548 = vmatprep.subr.mxu0 %v253_v16  ;;  %v265_v32 = vld [vmem:[#allocation6 + $0x130] sm:$0xff]  ;;  %214 = vst [vmem:[#allocation2] sm:$0x1] %v213_v30  ;;  %v959_v34 = vld [vmem:[%s944_s10 + $0x8] sm:$0xff]  ;;  %v207_v39 = vrot.slane %v202_v36, 7  ;;  %v247_v43 = vld [vmem:[#allocation6 + $0xa0] sm:$0xff] }
  0x57   : > { %603 = vmatpush3.msra.mxu1 %v270_v15  ;;  %549 = vmatpush3.msra.mxu0 %v237_v17  ;;  %v962_v35 = vld [vmem:[%s944_s10 + $0x1] sm:$0xff]  ;;  %v216_v37 = vld [vmem:[%s944_s10 + $0x9] sm:$0x7f]  ;;  %211 = vst [vmem:[#allocation2] sm:$0xfe] %v206_v33 }
  0x58   : > { %604 = vmatprep.subr.mxu1 %v269_v18  ;;  %550 = vmatprep.subr.mxu0 %v252_v19  ;;  %218 = vst [vmem:[#allocation2 + $0x28] sm:$0x7f] %v216_v37  ;;  %v219_v40 = vld [vmem:[%s944_s10] sm:$0x1]  ;;  %v232_v41 = vld [vmem:[#allocation6 + $0x28] sm:$0xff]  ;;  %v208_v44 = vsel %vm205_vm0, %v206_v33, %v207_v39  ;;  %v246_v47 = vld [vmem:[#allocation6 + $0x98] sm:$0xff] }
  0x59   : > { %605 = vmatpush3.msra.mxu1 %v269_v18  ;;  %551 = vmatpush3.msra.mxu0 %v236_v20  ;;  %v264_v42 = vld [vmem:[#allocation6 + $0x128] sm:$0xff]  ;;  %220 = vst [vmem:[#allocation2 + $0x2f] sm:$0x1] %v219_v40  ;;  %v231_v45 = vld [vmem:[#allocation6 + $0x20] sm:$0xff]  ;;  %v230_v48 = vld [vmem:[#allocation6 + $0x18] sm:$0xff] }
  0x5a   : > { %606 = vmatprep.subr.mxu1 %v268_v21  ;;  %552 = vmatprep.subr.mxu0 %v251_v22  ;;  %v263_v46 = vld [vmem:[#allocation6 + $0x120] sm:$0xff]  ;;  %v262_v49 = vld [vmem:[#allocation6 + $0x118] sm:$0xff]  ;;  %v245_v50 = vld [vmem:[#allocation6 + $0x90] sm:$0xff] }
  0x5b   : > { %607 = vmatpush3.msra.mxu1 %v268_v21  ;;  %553 = vmatpush3.msra.mxu0 %v235_v23  ;;  %v229_v51 = vld [vmem:[#allocation6 + $0x10] sm:$0xff]  ;;  %v244_v53 = vld [vmem:[#allocation6 + $0x88] sm:$0xff]  ;;  %v243_v55 = vld [vmem:[#allocation6 + $0x80] sm:$0xff] }
  0x5c   : > { %608 = vmatprep.subr.mxu1 %v267_v24  ;;  %554 = vmatprep.subr.mxu0 %v250_v25  ;;  %v261_v52 = vld [vmem:[#allocation6 + $0x110] sm:$0xff]  ;;  %v228_v54 = vld [vmem:[#allocation6 + $0x8] sm:$0xff]  ;;  %v227_v57 = vld [vmem:[#allocation6] sm:$0xff] }
  0x5d   : > { %609 = vmatpush3.msra.mxu1 %v267_v24  ;;  %555 = vmatpush3.msra.mxu0 %v234_v26  ;;  %v260_v56 = vld [vmem:[#allocation6 + $0x108] sm:$0xff]  ;;  %v259_v59 = vld [vmem:[#allocation6 + $0x100] sm:$0xff]  ;;  %v532_v63 = vld [vmem:[%s1000_s2] ss:$0 sm:$0xff] }
  0x5e   : > { %610 = vmatprep.subr.mxu1 %v266_v28  ;;  %556 = vmatprep.subr.mxu0 %v249_v27  ;;  %v221_v58 = vld [vmem:[#allocation2] sm:$0xff]  ;;  %v432_v23 = vld [vmem:[#allocation8] sm:$0x1]  ;;  %v442_v26 = vld [vmem:[#allocation8 + $0x1] sm:$0x1] }
  0x5f   : > { %611 = vmatpush3.msra.mxu1 %v266_v28  ;;  %557 = vmatpush3.msra.mxu0 %v233_v31 }
  0x60   : > { %612 = vmatprep.subr.mxu1 %v265_v32  ;;  %558 = vmatprep.subr.mxu0 %v248_v38  ;;  %v226_v60 = vld [vmem:[#allocation2 + $0x28] sm:$0xff] }
  0x61   : > { %613 = vmatpush3.msra.mxu1 %v265_v32  ;;  %559 = vmatpush3.msra.mxu0 %v232_v41 }
  0x62   : > { %614 = vmatprep.subr.mxu1 %v264_v42  ;;  %560 = vmatprep.subr.mxu0 %v247_v43 }
  0x63   : > { %615 = vmatpush3.msra.mxu1 %v264_v42  ;;  %561 = vmatpush3.msra.mxu0 %v231_v45 }
  0x64   : > { %616 = vmatprep.subr.mxu1 %v263_v46  ;;  %562 = vmatprep.subr.mxu0 %v246_v47 }
  0x65   : > { %617 = vmatpush3.msra.mxu1 %v263_v46  ;;  %563 = vmatpush3.msra.mxu0 %v230_v48 }
  0x66   : > { %618 = vmatprep.subr.mxu1 %v262_v49  ;;  %564 = vmatprep.subr.mxu0 %v245_v50 }
  0x67   : > { %619 = vmatpush3.msra.mxu1 %v262_v49  ;;  %565 = vmatpush3.msra.mxu0 %v229_v51 }
  0x68   : > { %620 = vmatprep.subr.mxu1 %v261_v52  ;;  %566 = vmatprep.subr.mxu0 %v244_v53 }
  0x69   : > { %346 = vmatprep.mubr.f32.mxu0 %v197_v29  ;;  %567 = vmatpush3.msra.mxu0 %v228_v54 }
  0x6a   : > { %621 = vmatpush3.msra.mxu1 %v261_v52  ;;  %568 = vmatprep.subr.mxu0 %v243_v55 }
  0x6b   : > { %622 = vmatprep.subr.mxu1 %v260_v56  ;;  %569 = vmatpush3.msra.mxu0 %v227_v57 }
  0x6c   : > { %623 = vmatpush3.msra.mxu1 %v260_v56  ;;  %347 = vmatmul.mubr.f32.vlgmr.msra.gmra.mxu0 %v221_v58 }
  0x6d   : > { %624 = vmatprep.subr.mxu1 %v259_v59  ;;  %351 = vmatprep.mubr.f32.mxu0 %v959_v34 }
  0x6e   : > { %625 = vmatpush3.msra.mxu1 %v259_v59  ;;  %626 = vmatprep.mubr.f32.mxu1 %v962_v35 }
  0x6f   : > { %627 = vmatmul.mubr.f32.vlgmr.msra.gmra.mxu1 %v226_v60 }
  0x70   : > { %352 = vmatmul.mubr.f32.gmra.mxu0 %v208_v44 }
 0x12c   : > { %v570_v61 = vpop.f32.mrf.mxu0 }
 0x12e   : > { %v571_v62 = vpop.f32.mrf.mxu0 }
 0x12f   : > { %v572_v0 = vadd.f32 %v571_v62, %v570_v61  ;;  %v628_v1 = vpop.f32.mrf.mxu1 }
 0x130   : > { %v573_v2 = vpop.f32.mrf.mxu0 }
 0x131   : > { %v349_v3 = vadd.f32 %v572_v0, %v532_v63  ;;  %v423_v5 = vpop.f32.mrf.mxu1 }
 0x132   : > { %v574_v4 = vpop.f32.mrf.mxu0 }
 0x133   : > { %v575_v6 = vadd.f32 %v574_v4, %v573_v2  ;;  %v424_v8 = vadd.f32 %v423_v5, %v349_v3 }
 0x135   : > { %v354_v7 = vadd.f32 %v575_v6, %v532_v63  ;;  %v443_v11 = vmul.f32 %v424_v8, %v424_v8 }
 0x137   : > { %v429_v9 = vadd.f32 %v628_v1, %v354_v7 }
 0x139   : > { %v433_v10 = vadd.f32 %v429_v9, %v424_v8  ;;  %v444_v12 = vmul.f32 %v429_v9, %v429_v9 }
 0x13b   : > { %v434_v13 = vrot.slane %v433_v10, 4  ;;  %v445_v14 = vadd.f32 %v444_v12, %v443_v11 }
 0x13d   : > { %v435_v15 = vadd.f32 %v434_v13, %v433_v10  ;;  %v446_v16 = vrot.slane %v445_v14, 4 }
 0x13f   : > { %v436_v17 = vrot.slane %v435_v15, 2  ;;  %v447_v18 = vadd.f32 %v446_v16, %v445_v14 }
 0x141   : > { %v437_v19 = vadd.f32 %v436_v17, %v435_v15  ;;  %v448_v20 = vrot.slane %v447_v18, 2 }
 0x143   : > { %v438_v21 = vrot.slane %v437_v19, 1  ;;  %v449_v22 = vadd.f32 %v448_v20, %v447_v18 }
 0x145   : > { %v439_v24 = vadd.f32 %v438_v21, %v437_v19  ;;  %v450_v25 = vrot.slane %v449_v22, 1 }
 0x147   : > { %v440_v27 = vadd.f32 %v439_v24, %v432_v23  ;;  %v451_v28 = vadd.f32 %v450_v25, %v449_v22 }
 0x149   : > { %441 = vst [vmem:[#allocation8] sm:$0x1] %v440_v27  ;;  %v452_v29 = vadd.f32 %v451_v28, %v442_v26 }
 0x14b   : > { %453 = vst [vmem:[#allocation8 + $0x1] sm:$0x1] %v452_v29 }
 0x14c   : > { %756 = shalt.err (!%p753_p13)
}
 0x14d   : > { %636 = dma.vmem_to_hbm [thread:$0]  (%p650_p0), %s462_s27, 32, %s1001_s3, [#allocation5]  }
 0x14e   : > { %792 = dma.done.wait (%p650_p0), [#allocation5], 32  }
 0x14f   : > { %794 = vsyncadd (%p650_p0), [#allocation5], 4294967264 }
 0x150 PF: > { %p15_p2 = scmp.ge.s32.totalorder %s882_s22, 4   ;;  %s1014_s12 = smov %s801_s13 }
 0x151   : > { %s1015_s13 = smov %s805_s14  ;;  %s1016_s14 = smov %s902_s30 }
 0x152   : > { %s1017_s15 = smov %s882_s22  ;;  %17 = sbr.rel (!%p15_p2) target bundleno = 5 (0x5), region = 77 }
 0x157   :  { %474 = vsyncpa [#allocation4], 1 }
 0x158   :  { %476 = vsyncpa [#allocation4 + $0x1], 1 }
 0x159   :  { %477 = vsyncpa [#allocation7], 1 }
 0x15a   :  { %478 = vsyncpa [#allocation5], 1 }
 0x15b   :  { %480 = vsyncpa [#allocation5 + $0x1], 1 }

</bundles_post_ra>
